<compile_context>
chip_gen: v6e
topology: v6e:2x2x1
jax: 0.10.0
libtpu: 0.0.40
codegen_flags: <defaults>
</compile_context>

<pallas_src>
import functools
import math

import jax
import jax.numpy as jnp
from jax.experimental import pallas as pl
from jax.experimental.pallas import tpu as pltpu


# ----------------------------- kernel helpers ------------------------------

def _layernorm(x, gamma, beta, eps=1e-5):
    # PyTorch nn.LayerNorm semantics: biased variance, eps inside rsqrt.
    mean = jnp.mean(x, axis=-1, keepdims=True)
    var = jnp.mean(jnp.square(x - mean), axis=-1, keepdims=True)
    return (x - mean) * jax.lax.rsqrt(var + eps) * gamma + beta


def _gelu_tanh(x):
    # TODO(synk): PyTorch's default nn.GELU() is the exact erf form; the tanh
    # approximation is used for robust Mosaic lowering (max diff ~1e-3).
    c = math.sqrt(2.0 / math.pi)
    return 0.5 * x * (1.0 + jnp.tanh(c * (x + 0.044715 * x * x * x)))


# -------------------------------- the kernel --------------------------------

def transformer_block_kernel(x_ref, mask_ref,
                             g1_ref, b1_ref,
                             wqkv_ref, bqkv_ref,
                             wpr_ref, bpr_ref,
                             g2_ref, b2_ref,
                             wfc_ref, bfc_ref, wf2_ref, bf2_ref,
                             out_ref, *, n_head):
    bc, T, C = x_ref.shape
    H = n_head
    D = C // H
    M = bc * T                                 # batch folded into the matmul M dim
    mdt = wqkv_ref.dtype                       # MXU operand dtype (bf16 or f32)

    x = x_ref[...].reshape(M, C).astype(jnp.float32)

    # ---------------- LN1 + causal multi-head self-attention ----------------
    xn = _layernorm(x, g1_ref[...], b1_ref[...])
    mask = mask_ref[...]                       # (T, T) additive mask, 0 / -1e30

    # One fused QKV projection (1/sqrt(D) already baked into W_q / b_q).
    qkv = jnp.dot(xn.astype(mdt), wqkv_ref[...],
                  preferred_element_type=jnp.float32) + bqkv_ref[...]
    q = qkv[:, :C]
    k = qkv[:, C:2 * C]
    v = qkv[:, 2 * C:]

    # Per-head attention core (static lane slices; reshapes only split leading dims).
    heads = []
    for h in range(H):                         # static unroll; H is small here
        qh = q[:, h * D:(h + 1) * D].reshape(bc, T, D)
        kh = k[:, h * D:(h + 1) * D].reshape(bc, T, D)
        vh = v[:, h * D:(h + 1) * D].reshape(bc, T, D)

        s = jnp.einsum('bqd,bkd->bqk', qh.astype(mdt), kh.astype(mdt),
                       preferred_element_type=jnp.float32) + mask
        s = s - jnp.max(s, axis=-1, keepdims=True)
        p = jnp.exp(s)
        p = p / jnp.sum(p, axis=-1, keepdims=True)     # exact normalization

        oh = jnp.einsum('bqk,bkd->bqd', p.astype(mdt), vh.astype(mdt),
                        preferred_element_type=jnp.float32)
        heads.append(oh.reshape(M, D))

    # Lane-contiguous head merge, then a single (M, C) @ (C, C) output projection.
    o = jnp.concatenate(heads, axis=-1)
    attn = jnp.dot(o.astype(mdt), wpr_ref[...], preferred_element_type=jnp.float32)
    x1 = x + attn + bpr_ref[...]               # first residual (+ proj bias)

    # ------------------------------ LN2 + FFN --------------------------------
    xn2 = _layernorm(x1, g2_ref[...], b2_ref[...])
    hdn = jnp.dot(xn2.astype(mdt), wfc_ref[...],
                  preferred_element_type=jnp.float32) + bfc_ref[...]
    hdn = _gelu_tanh(hdn)
    ffn = jnp.dot(hdn.astype(mdt), wf2_ref[...],
                  preferred_element_type=jnp.float32) + bf2_ref[...]
    out_ref[...] = (x1 + ffn).reshape(bc, T, C).astype(out_ref.dtype)


# -------------------------------- wrapper -----------------------------------

def vanilla_transformer_block(x, params, n_head, *, batch_chunk=None,
                              matmul_dtype=jnp.bfloat16):
    """params follow the PyTorch module layout:
       (ln1_g, ln1_b, W_qkv (C,3C), b_qkv (1,3C), W_proj (C,C), b_proj (1,C),
        ln2_g, ln2_b, W_fc (C,4C), b_fc (1,4C), W_ffnproj (4C,C), b_ffnproj (1,C)).

    batch_chunk: default B (one program, whole batch).  Only set batch_chunk = B//2
    (2-TensorCore "parallel" split) on v7x AND when per-core rows B*T/2 are at least a
    few hundred; otherwise the ~0.35us/step grid cost dominates.
    matmul_dtype: dtype of MXU operands (weights + activations at matmul sites).
    bf16 is MXU-native on v5e/v6e/v7x and halves weight DMA; f32 gives exact parity."""
    B, T, C = x.shape
    H = n_head
    D = C // H
    (g1, b1, wqkv, bqkv, wpr, bpr, g2, b2, wfc, bfc, wf2, bf2) = params

    if batch_chunk is None:
        batch_chunk = B
    assert B % batch_chunk == 0
    n_chunks = B // batch_chunk

    # One-time wrapper-side prep: bake 1/sqrt(D) into W_q / b_q (first C columns of the
    # fused QKV weight) and cast matmul weights to the MXU operand dtype.
    scale_vec = jnp.concatenate(
        [jnp.full((1, C), 1.0 / math.sqrt(D), jnp.float32),
         jnp.ones((1, 2 * C), jnp.float32)], axis=-1)
    wqkv_s = (wqkv.astype(jnp.float32) * scale_vec).astype(matmul_dtype)
    bqkv_s = (bqkv.astype(jnp.float32) * scale_vec)
    wpr_m = wpr.astype(matmul_dtype)
    wfc_m = wfc.astype(matmul_dtype)
    wf2_m = wf2.astype(matmul_dtype)

    # Additive causal mask, computed once (grid-invariant input).
    mask = jnp.where(jnp.tril(jnp.ones((T, T), dtype=bool)), 0.0, -1e30)
    mask = mask.astype(jnp.float32)

    def const(shape):
        # Grid-invariant operand: single-buffered (double-buffering a constant block is
        # pure VMEM waste -- matters on v7x's 64 MiB VMEM).
        return pl.BlockSpec(shape, lambda i: (0,) * len(shape),
                            pipeline_mode=pl.Buffered(1))

    in_specs = [
        pl.BlockSpec((batch_chunk, T, C), lambda i: (i, 0, 0)),   # x
        const((T, T)),                                            # causal mask
        const((1, C)), const((1, C)),                             # ln_1 gamma/beta
        const((C, 3 * C)), const((1, 3 * C)),                     # fused W_qkv, b_qkv
        const((C, C)), const((1, C)),                             # attn out-proj
        const((1, C)), const((1, C)),                             # ln_2 gamma/beta
        const((C, 4 * C)), const((1, 4 * C)),                     # ffn.c_fc
        const((4 * C, C)), const((1, C)),                         # ffn.c_proj
    ]

    # Advisory cost estimate for XLA's scheduler.
    w_item = jnp.dtype(matmul_dtype).itemsize
    flops = 24 * B * T * C * C + 4 * B * T * T * C
    transcendentals = B * T * 4 * C + B * H * T * T
    bytes_accessed = (2 * B * T * C * 4            # x in + out (f32)
                      + 12 * C * C * w_item        # matmul weights
                      + (T * T + 12 * C) * 4)      # mask + biases/gains (f32)

    kernel = functools.partial(transformer_block_kernel, n_head=H)
    return pl.pallas_call(
        kernel,
        out_shape=jax.ShapeDtypeStruct((B, T, C), x.dtype),
        grid=(n_chunks,),
        in_specs=in_specs,
        out_specs=pl.BlockSpec((batch_chunk, T, C), lambda i: (i, 0, 0)),
        compiler_params=pltpu.CompilerParams(
            dimension_semantics=("parallel",),
            vmem_limit_bytes=32 * 1024 * 1024),
        cost_estimate=pl.CostEstimate(flops=flops,
                                      transcendentals=transcendentals,
                                      bytes_accessed=bytes_accessed),
    )(x, mask, g1, b1, wqkv_s, bqkv_s, wpr_m, bpr, g2, b2, wfc_m, bfc, wf2_m, bf2)


# ------------------------- pure-JAX reference check --------------------------

def reference_block(x, params, n_head):
    (g1, b1, wqkv, bqkv, wpr, bpr, g2, b2, wfc, bfc, wf2, bf2) = params
    B, T, C = x.shape
    D = C // n_head

    def one(xb):
        xn = _layernorm(xb, g1, b1)
        qkv = xn @ wqkv + bqkv
        q, k, v = qkv[:, :C], qkv[:, C:2 * C], qkv[:, 2 * C:]
        mask = jnp.tril(jnp.ones((T, T), bool))
        heads = []
        for h in range(n_head):
            qh, kh, vh = (a[:, h * D:(h + 1) * D] for a in (q, k, v))
            s = (qh @ kh.T) / math.sqrt(D)
            s = jnp.where(mask, s, -jnp.inf)
            p = jax.nn.softmax(s, axis=-1)
            heads.append(p @ vh)
        attn = jnp.concatenate(heads, -1) @ wpr + bpr
        x1 = xb + attn
        xn2 = _layernorm(x1, g2, b2)
        ffn = _gelu_tanh(xn2 @ wfc + bfc) @ wf2 + bf2
        return x1 + ffn

    return jax.vmap(one)(x)


# ---------------------------------- main -------------------------------------

if __name__ == "__main__":
    B, T, C, n_head = 2, 8, 32, 4
    key = jax.random.PRNGKey(0)
    ks = jax.random.split(key, 16)
    std = 0.02
    f32 = jnp.float32

    x = jax.random.normal(ks[0], (B, T, C), f32)

    params = (
        1.0 + 0.1 * jax.random.normal(ks[1], (1, C), f32),        # ln_1 gamma
        0.1 * jax.random.normal(ks[2], (1, C), f32),              # ln_1 beta
        std * jax.random.normal(ks[3], (C, 3 * C), f32),          # W_qkv
        std * jax.random.normal(ks[4], (1, 3 * C), f32),          # b_qkv
        std * jax.random.normal(ks[5], (C, C), f32),              # W_attn_proj
        std * jax.random.normal(ks[6], (1, C), f32),              # b_attn_proj
        1.0 + 0.1 * jax.random.normal(ks[7], (1, C), f32),        # ln_2 gamma
        0.1 * jax.random.normal(ks[8], (1, C), f32),              # ln_2 beta
        std * jax.random.normal(ks[9], (C, 4 * C), f32),          # W_fc
        std * jax.random.normal(ks[10], (1, 4 * C), f32),         # b_fc
        std * jax.random.normal(ks[11], (4 * C, C), f32),         # W_ffn_proj
        std * jax.random.normal(ks[12], (1, C), f32),             # b_ffn_proj
    )

    ref = reference_block(x, params, n_head)

    # Strict parity check (f32 MXU operands).
    out_f32 = vanilla_transformer_block(x, params, n_head, matmul_dtype=jnp.float32)
    out_f32 = jax.block_until_ready(out_f32)
    assert out_f32.shape == (B, T, C) and out_f32.dtype == jnp.float32
    assert jnp.allclose(out_f32, ref, rtol=1e-3, atol=1e-3), "f32 kernel != reference"

    # Default (bf16 MXU operands) path; looser tolerance for bf16 operand rounding.
    out_bf16 = vanilla_transformer_block(x, params, n_head)
    out_bf16 = jax.block_until_ready(out_bf16)
    assert out_bf16.shape == (B, T, C) and out_bf16.dtype == jnp.float32
    assert jnp.allclose(out_bf16, ref, rtol=3e-2, atol=3e-2), "bf16 kernel != reference"

    print("KERNEL_OK")
</pallas_src>

<mosaic_0001>
module attributes {stable_mosaic.version = 11 : i64} {
  func.func @transformer_block_kernel(%arg0: i32, %arg1: memref<2x8x32xf32, #tpu.memory_space<vmem>>, %arg2: memref<8x8xf32, #tpu.memory_space<vmem>>, %arg3: memref<1x32xf32, #tpu.memory_space<vmem>>, %arg4: memref<1x32xf32, #tpu.memory_space<vmem>>, %arg5: memref<32x96xf32, #tpu.memory_space<vmem>>, %arg6: memref<1x96xf32, #tpu.memory_space<vmem>>, %arg7: memref<32x32xf32, #tpu.memory_space<vmem>>, %arg8: memref<1x32xf32, #tpu.memory_space<vmem>>, %arg9: memref<1x32xf32, #tpu.memory_space<vmem>>, %arg10: memref<1x32xf32, #tpu.memory_space<vmem>>, %arg11: memref<32x128xf32, #tpu.memory_space<vmem>>, %arg12: memref<1x128xf32, #tpu.memory_space<vmem>>, %arg13: memref<128x32xf32, #tpu.memory_space<vmem>>, %arg14: memref<1x32xf32, #tpu.memory_space<vmem>>, %arg15: memref<2x8x32xf32, #tpu.memory_space<vmem>>) attributes {dimension_semantics = [#tpu.dimension_semantics<parallel>], iteration_bounds = array<i64: 1>, scalar_prefetch = 0 : i64, scratch_operands = 0 : i64, tpu.core_type = #tpu.core_type<tc>, window_params = [{transform_indices = @transform_0, window_bounds = array<i64: 2, 8, 32>}, {pipeline_mode = #tpu.pipeline_mode<synchronous>, transform_indices = @transform_1, window_bounds = array<i64: 8, 8>}, {pipeline_mode = #tpu.pipeline_mode<synchronous>, transform_indices = @transform_2, window_bounds = array<i64: 1, 32>}, {pipeline_mode = #tpu.pipeline_mode<synchronous>, transform_indices = @transform_3, window_bounds = array<i64: 1, 32>}, {pipeline_mode = #tpu.pipeline_mode<synchronous>, transform_indices = @transform_4, window_bounds = array<i64: 32, 96>}, {pipeline_mode = #tpu.pipeline_mode<synchronous>, transform_indices = @transform_5, window_bounds = array<i64: 1, 96>}, {pipeline_mode = #tpu.pipeline_mode<synchronous>, transform_indices = @transform_6, window_bounds = array<i64: 32, 32>}, {pipeline_mode = #tpu.pipeline_mode<synchronous>, transform_indices = @transform_7, window_bounds = array<i64: 1, 32>}, {pipeline_mode = #tpu.pipeline_mode<synchronous>, transform_indices = @transform_8, window_bounds = array<i64: 1, 32>}, {pipeline_mode = #tpu.pipeline_mode<synchronous>, transform_indices = @transform_9, window_bounds = array<i64: 1, 32>}, {pipeline_mode = #tpu.pipeline_mode<synchronous>, transform_indices = @transform_10, window_bounds = array<i64: 32, 128>}, {pipeline_mode = #tpu.pipeline_mode<synchronous>, transform_indices = @transform_11, window_bounds = array<i64: 1, 128>}, {pipeline_mode = #tpu.pipeline_mode<synchronous>, transform_indices = @transform_12, window_bounds = array<i64: 128, 32>}, {pipeline_mode = #tpu.pipeline_mode<synchronous>, transform_indices = @transform_13, window_bounds = array<i64: 1, 32>}, {transform_indices = @transform_14, window_bounds = array<i64: 2, 8, 32>}]} {
    %c0 = arith.constant 0 : index
    %c0_0 = arith.constant 0 : index
    %c0_1 = arith.constant 0 : index
    %0 = vector.load %arg1[%c0, %c0_0, %c0_1] : memref<2x8x32xf32, #tpu.memory_space<vmem>>, vector<2x8x32xf32>
    %1 = vector.shape_cast %0 : vector<2x8x32xf32> to vector<16x32xf32>
    %c0_2 = arith.constant 0 : index
    %c0_3 = arith.constant 0 : index
    %2 = vector.load %arg3[%c0_2, %c0_3] : memref<1x32xf32, #tpu.memory_space<vmem>>, vector<1x32xf32>
    %c0_4 = arith.constant 0 : index
    %c0_5 = arith.constant 0 : index
    %3 = vector.load %arg4[%c0_4, %c0_5] : memref<1x32xf32, #tpu.memory_space<vmem>>, vector<1x32xf32>
    %cst = arith.constant dense<0.000000e+00> : vector<16xf32>
    %4 = vector.multi_reduction <add>, %1, %cst [1] : vector<16x32xf32> to vector<16xf32>
    %5 = vector.shape_cast %4 : vector<16xf32> to vector<16x1xf32>
    %cst_6 = arith.constant 3.200000e+01 : f32
    %6 = vector.broadcast %cst_6 : f32 to vector<16x1xf32>
    %7 = arith.divf %5, %6 : vector<16x1xf32>
    %8 = vector.broadcast %7 : vector<16x1xf32> to vector<16x32xf32>
    %9 = arith.subf %1, %8 : vector<16x32xf32>
    %10 = arith.mulf %9, %9 : vector<16x32xf32>
    %cst_7 = arith.constant dense<0.000000e+00> : vector<16xf32>
    %11 = vector.multi_reduction <add>, %10, %cst_7 [1] : vector<16x32xf32> to vector<16xf32>
    %12 = vector.shape_cast %11 : vector<16xf32> to vector<16x1xf32>
    %cst_8 = arith.constant 3.200000e+01 : f32
    %13 = vector.broadcast %cst_8 : f32 to vector<16x1xf32>
    %14 = arith.divf %12, %13 : vector<16x1xf32>
    %15 = vector.broadcast %7 : vector<16x1xf32> to vector<16x32xf32>
    %16 = arith.subf %1, %15 : vector<16x32xf32>
    %cst_9 = arith.constant 9.99999974E-6 : f32
    %17 = vector.broadcast %cst_9 : f32 to vector<16x1xf32>
    %18 = arith.addf %14, %17 : vector<16x1xf32>
    %19 = math.rsqrt %18 : vector<16x1xf32>
    %20 = vector.broadcast %19 : vector<16x1xf32> to vector<16x32xf32>
    %21 = arith.mulf %16, %20 : vector<16x32xf32>
    %22 = vector.broadcast %2 : vector<1x32xf32> to vector<16x32xf32>
    %23 = arith.mulf %21, %22 : vector<16x32xf32>
    %24 = vector.broadcast %3 : vector<1x32xf32> to vector<16x32xf32>
    %25 = arith.addf %23, %24 : vector<16x32xf32>
    %c0_10 = arith.constant 0 : index
    %c0_11 = arith.constant 0 : index
    %26 = vector.load %arg2[%c0_10, %c0_11] : memref<8x8xf32, #tpu.memory_space<vmem>>, vector<8x8xf32>
    %c0_12 = arith.constant 0 : index
    %c0_13 = arith.constant 0 : index
    %27 = vector.load %arg5[%c0_12, %c0_13] : memref<32x96xf32, #tpu.memory_space<vmem>>, vector<32x96xf32>
    %cst_14 = arith.constant dense<0.000000e+00> : vector<16x96xf32>
    %28 = tpu.matmul %25, %27, %cst_14 {dimension_numbers = #tpu.dot_dimension_numbers<[1], [0], [0], [1], [0, 0, 1, 1], [], []>} : vector<16x32xf32>, vector<32x96xf32>, vector<16x96xf32> -> vector<16x96xf32>
    %c0_15 = arith.constant 0 : index
    %c0_16 = arith.constant 0 : index
    %29 = vector.load %arg6[%c0_15, %c0_16] : memref<1x96xf32, #tpu.memory_space<vmem>>, vector<1x96xf32>
    %30 = vector.broadcast %29 : vector<1x96xf32> to vector<16x96xf32>
    %31 = arith.addf %28, %30 : vector<16x96xf32>
    %32 = vector.extract_strided_slice %31 {offsets = [0, 0], sizes = [16, 32], strides = [1, 1]} : vector<16x96xf32> to vector<16x32xf32>
    %33 = vector.extract_strided_slice %31 {offsets = [0, 32], sizes = [16, 32], strides = [1, 1]} : vector<16x96xf32> to vector<16x32xf32>
    %34 = vector.extract_strided_slice %31 {offsets = [0, 64], sizes = [16, 32], strides = [1, 1]} : vector<16x96xf32> to vector<16x32xf32>
    %35 = vector.extract_strided_slice %32 {offsets = [0, 0], sizes = [16, 8], strides = [1, 1]} : vector<16x32xf32> to vector<16x8xf32>
    %36 = vector.shape_cast %35 : vector<16x8xf32> to vector<2x8x8xf32>
    %37 = vector.extract_strided_slice %33 {offsets = [0, 0], sizes = [16, 8], strides = [1, 1]} : vector<16x32xf32> to vector<16x8xf32>
    %38 = vector.shape_cast %37 : vector<16x8xf32> to vector<2x8x8xf32>
    %39 = vector.extract_strided_slice %34 {offsets = [0, 0], sizes = [16, 8], strides = [1, 1]} : vector<16x32xf32> to vector<16x8xf32>
    %40 = vector.shape_cast %39 : vector<16x8xf32> to vector<2x8x8xf32>
    "tpu.trace_start"() <{level = 10 : i32, message = "bqd,bkd->bqk"}> : () -> ()
    %cst_17 = arith.constant dense<0.000000e+00> : vector<2x8x8xf32>
    %41 = tpu.matmul %36, %38, %cst_17 {dimension_numbers = #tpu.dot_dimension_numbers<[2], [2], [1], [1], [0, 0, 0, 1, 1, 1], [0], [0]>} : vector<2x8x8xf32>, vector<2x8x8xf32>, vector<2x8x8xf32> -> vector<2x8x8xf32>
    "tpu.trace_stop"() : () -> ()
    %42 = vector.shape_cast %26 : vector<8x8xf32> to vector<1x8x8xf32>
    %43 = vector.broadcast %42 : vector<1x8x8xf32> to vector<2x8x8xf32>
    %44 = arith.addf %41, %43 : vector<2x8x8xf32>
    %cst_18 = arith.constant dense<0xFF800000> : vector<2x8xf32>
    %45 = vector.multi_reduction <maximumf>, %44, %cst_18 [2] : vector<2x8x8xf32> to vector<2x8xf32>
    %46 = vector.shape_cast %45 : vector<2x8xf32> to vector<2x8x1xf32>
    %47 = vector.broadcast %46 : vector<2x8x1xf32> to vector<2x8x8xf32>
    %48 = arith.subf %44, %47 : vector<2x8x8xf32>
    %49 = math.exp %48 : vector<2x8x8xf32>
    %cst_19 = arith.constant dense<0.000000e+00> : vector<2x8xf32>
    %50 = vector.multi_reduction <add>, %49, %cst_19 [2] : vector<2x8x8xf32> to vector<2x8xf32>
    %51 = vector.shape_cast %50 : vector<2x8xf32> to vector<2x8x1xf32>
    %52 = vector.broadcast %51 : vector<2x8x1xf32> to vector<2x8x8xf32>
    %53 = arith.divf %49, %52 : vector<2x8x8xf32>
    "tpu.trace_start"() <{level = 10 : i32, message = "bqk,bkd->bqd"}> : () -> ()
    %cst_20 = arith.constant dense<0.000000e+00> : vector<2x8x8xf32>
    %54 = tpu.matmul %53, %40, %cst_20 {dimension_numbers = #tpu.dot_dimension_numbers<[2], [1], [1], [2], [0, 0, 0, 1, 1, 2], [0], [0]>} : vector<2x8x8xf32>, vector<2x8x8xf32>, vector<2x8x8xf32> -> vector<2x8x8xf32>
    "tpu.trace_stop"() : () -> ()
    %55 = vector.shape_cast %54 : vector<2x8x8xf32> to vector<16x8xf32>
    %56 = vector.extract_strided_slice %32 {offsets = [0, 8], sizes = [16, 8], strides = [1, 1]} : vector<16x32xf32> to vector<16x8xf32>
    %57 = vector.shape_cast %56 : vector<16x8xf32> to vector<2x8x8xf32>
    %58 = vector.extract_strided_slice %33 {offsets = [0, 8], sizes = [16, 8], strides = [1, 1]} : vector<16x32xf32> to vector<16x8xf32>
    %59 = vector.shape_cast %58 : vector<16x8xf32> to vector<2x8x8xf32>
    %60 = vector.extract_strided_slice %34 {offsets = [0, 8], sizes = [16, 8], strides = [1, 1]} : vector<16x32xf32> to vector<16x8xf32>
    %61 = vector.shape_cast %60 : vector<16x8xf32> to vector<2x8x8xf32>
    "tpu.trace_start"() <{level = 10 : i32, message = "bqd,bkd->bqk"}> : () -> ()
    %cst_21 = arith.constant dense<0.000000e+00> : vector<2x8x8xf32>
    %62 = tpu.matmul %57, %59, %cst_21 {dimension_numbers = #tpu.dot_dimension_numbers<[2], [2], [1], [1], [0, 0, 0, 1, 1, 1], [0], [0]>} : vector<2x8x8xf32>, vector<2x8x8xf32>, vector<2x8x8xf32> -> vector<2x8x8xf32>
    "tpu.trace_stop"() : () -> ()
    %63 = vector.shape_cast %26 : vector<8x8xf32> to vector<1x8x8xf32>
    %64 = vector.broadcast %63 : vector<1x8x8xf32> to vector<2x8x8xf32>
    %65 = arith.addf %62, %64 : vector<2x8x8xf32>
    %cst_22 = arith.constant dense<0xFF800000> : vector<2x8xf32>
    %66 = vector.multi_reduction <maximumf>, %65, %cst_22 [2] : vector<2x8x8xf32> to vector<2x8xf32>
    %67 = vector.shape_cast %66 : vector<2x8xf32> to vector<2x8x1xf32>
    %68 = vector.broadcast %67 : vector<2x8x1xf32> to vector<2x8x8xf32>
    %69 = arith.subf %65, %68 : vector<2x8x8xf32>
    %70 = math.exp %69 : vector<2x8x8xf32>
    %cst_23 = arith.constant dense<0.000000e+00> : vector<2x8xf32>
    %71 = vector.multi_reduction <add>, %70, %cst_23 [2] : vector<2x8x8xf32> to vector<2x8xf32>
    %72 = vector.shape_cast %71 : vector<2x8xf32> to vector<2x8x1xf32>
    %73 = vector.broadcast %72 : vector<2x8x1xf32> to vector<2x8x8xf32>
    %74 = arith.divf %70, %73 : vector<2x8x8xf32>
    "tpu.trace_start"() <{level = 10 : i32, message = "bqk,bkd->bqd"}> : () -> ()
    %cst_24 = arith.constant dense<0.000000e+00> : vector<2x8x8xf32>
    %75 = tpu.matmul %74, %61, %cst_24 {dimension_numbers = #tpu.dot_dimension_numbers<[2], [1], [1], [2], [0, 0, 0, 1, 1, 2], [0], [0]>} : vector<2x8x8xf32>, vector<2x8x8xf32>, vector<2x8x8xf32> -> vector<2x8x8xf32>
    "tpu.trace_stop"() : () -> ()
    %76 = vector.shape_cast %75 : vector<2x8x8xf32> to vector<16x8xf32>
    %77 = vector.extract_strided_slice %32 {offsets = [0, 16], sizes = [16, 8], strides = [1, 1]} : vector<16x32xf32> to vector<16x8xf32>
    %78 = vector.shape_cast %77 : vector<16x8xf32> to vector<2x8x8xf32>
    %79 = vector.extract_strided_slice %33 {offsets = [0, 16], sizes = [16, 8], strides = [1, 1]} : vector<16x32xf32> to vector<16x8xf32>
    %80 = vector.shape_cast %79 : vector<16x8xf32> to vector<2x8x8xf32>
    %81 = vector.extract_strided_slice %34 {offsets = [0, 16], sizes = [16, 8], strides = [1, 1]} : vector<16x32xf32> to vector<16x8xf32>
    %82 = vector.shape_cast %81 : vector<16x8xf32> to vector<2x8x8xf32>
    "tpu.trace_start"() <{level = 10 : i32, message = "bqd,bkd->bqk"}> : () -> ()
    %cst_25 = arith.constant dense<0.000000e+00> : vector<2x8x8xf32>
    %83 = tpu.matmul %78, %80, %cst_25 {dimension_numbers = #tpu.dot_dimension_numbers<[2], [2], [1], [1], [0, 0, 0, 1, 1, 1], [0], [0]>} : vector<2x8x8xf32>, vector<2x8x8xf32>, vector<2x8x8xf32> -> vector<2x8x8xf32>
    "tpu.trace_stop"() : () -> ()
    %84 = vector.shape_cast %26 : vector<8x8xf32> to vector<1x8x8xf32>
    %85 = vector.broadcast %84 : vector<1x8x8xf32> to vector<2x8x8xf32>
    %86 = arith.addf %83, %85 : vector<2x8x8xf32>
    %cst_26 = arith.constant dense<0xFF800000> : vector<2x8xf32>
    %87 = vector.multi_reduction <maximumf>, %86, %cst_26 [2] : vector<2x8x8xf32> to vector<2x8xf32>
    %88 = vector.shape_cast %87 : vector<2x8xf32> to vector<2x8x1xf32>
    %89 = vector.broadcast %88 : vector<2x8x1xf32> to vector<2x8x8xf32>
    %90 = arith.subf %86, %89 : vector<2x8x8xf32>
    %91 = math.exp %90 : vector<2x8x8xf32>
    %cst_27 = arith.constant dense<0.000000e+00> : vector<2x8xf32>
    %92 = vector.multi_reduction <add>, %91, %cst_27 [2] : vector<2x8x8xf32> to vector<2x8xf32>
    %93 = vector.shape_cast %92 : vector<2x8xf32> to vector<2x8x1xf32>
    %94 = vector.broadcast %93 : vector<2x8x1xf32> to vector<2x8x8xf32>
    %95 = arith.divf %91, %94 : vector<2x8x8xf32>
    "tpu.trace_start"() <{level = 10 : i32, message = "bqk,bkd->bqd"}> : () -> ()
    %cst_28 = arith.constant dense<0.000000e+00> : vector<2x8x8xf32>
    %96 = tpu.matmul %95, %82, %cst_28 {dimension_numbers = #tpu.dot_dimension_numbers<[2], [1], [1], [2], [0, 0, 0, 1, 1, 2], [0], [0]>} : vector<2x8x8xf32>, vector<2x8x8xf32>, vector<2x8x8xf32> -> vector<2x8x8xf32>
    "tpu.trace_stop"() : () -> ()
    %97 = vector.shape_cast %96 : vector<2x8x8xf32> to vector<16x8xf32>
    %98 = vector.extract_strided_slice %32 {offsets = [0, 24], sizes = [16, 8], strides = [1, 1]} : vector<16x32xf32> to vector<16x8xf32>
    %99 = vector.shape_cast %98 : vector<16x8xf32> to vector<2x8x8xf32>
    %100 = vector.extract_strided_slice %33 {offsets = [0, 24], sizes = [16, 8], strides = [1, 1]} : vector<16x32xf32> to vector<16x8xf32>
    %101 = vector.shape_cast %100 : vector<16x8xf32> to vector<2x8x8xf32>
    %102 = vector.extract_strided_slice %34 {offsets = [0, 24], sizes = [16, 8], strides = [1, 1]} : vector<16x32xf32> to vector<16x8xf32>
    %103 = vector.shape_cast %102 : vector<16x8xf32> to vector<2x8x8xf32>
    "tpu.trace_start"() <{level = 10 : i32, message = "bqd,bkd->bqk"}> : () -> ()
    %cst_29 = arith.constant dense<0.000000e+00> : vector<2x8x8xf32>
    %104 = tpu.matmul %99, %101, %cst_29 {dimension_numbers = #tpu.dot_dimension_numbers<[2], [2], [1], [1], [0, 0, 0, 1, 1, 1], [0], [0]>} : vector<2x8x8xf32>, vector<2x8x8xf32>, vector<2x8x8xf32> -> vector<2x8x8xf32>
    "tpu.trace_stop"() : () -> ()
    %105 = vector.shape_cast %26 : vector<8x8xf32> to vector<1x8x8xf32>
    %106 = vector.broadcast %105 : vector<1x8x8xf32> to vector<2x8x8xf32>
    %107 = arith.addf %104, %106 : vector<2x8x8xf32>
    %cst_30 = arith.constant dense<0xFF800000> : vector<2x8xf32>
    %108 = vector.multi_reduction <maximumf>, %107, %cst_30 [2] : vector<2x8x8xf32> to vector<2x8xf32>
    %109 = vector.shape_cast %108 : vector<2x8xf32> to vector<2x8x1xf32>
    %110 = vector.broadcast %109 : vector<2x8x1xf32> to vector<2x8x8xf32>
    %111 = arith.subf %107, %110 : vector<2x8x8xf32>
    %112 = math.exp %111 : vector<2x8x8xf32>
    %cst_31 = arith.constant dense<0.000000e+00> : vector<2x8xf32>
    %113 = vector.multi_reduction <add>, %112, %cst_31 [2] : vector<2x8x8xf32> to vector<2x8xf32>
    %114 = vector.shape_cast %113 : vector<2x8xf32> to vector<2x8x1xf32>
    %115 = vector.broadcast %114 : vector<2x8x1xf32> to vector<2x8x8xf32>
    %116 = arith.divf %112, %115 : vector<2x8x8xf32>
    "tpu.trace_start"() <{level = 10 : i32, message = "bqk,bkd->bqd"}> : () -> ()
    %cst_32 = arith.constant dense<0.000000e+00> : vector<2x8x8xf32>
    %117 = tpu.matmul %116, %103, %cst_32 {dimension_numbers = #tpu.dot_dimension_numbers<[2], [1], [1], [2], [0, 0, 0, 1, 1, 2], [0], [0]>} : vector<2x8x8xf32>, vector<2x8x8xf32>, vector<2x8x8xf32> -> vector<2x8x8xf32>
    "tpu.trace_stop"() : () -> ()
    %118 = vector.shape_cast %117 : vector<2x8x8xf32> to vector<16x8xf32>
    %119 = tpu.concatenate %55, %76, %97, %118 in 1 : vector<16x8xf32>, vector<16x8xf32>, vector<16x8xf32>, vector<16x8xf32> -> vector<16x32xf32>
    %c0_33 = arith.constant 0 : index
    %c0_34 = arith.constant 0 : index
    %120 = vector.load %arg7[%c0_33, %c0_34] : memref<32x32xf32, #tpu.memory_space<vmem>>, vector<32x32xf32>
    %cst_35 = arith.constant dense<0.000000e+00> : vector<16x32xf32>
    %121 = tpu.matmul %119, %120, %cst_35 {dimension_numbers = #tpu.dot_dimension_numbers<[1], [0], [0], [1], [0, 0, 1, 1], [], []>} : vector<16x32xf32>, vector<32x32xf32>, vector<16x32xf32> -> vector<16x32xf32>
    %122 = arith.addf %1, %121 : vector<16x32xf32>
    %c0_36 = arith.constant 0 : index
    %c0_37 = arith.constant 0 : index
    %123 = vector.load %arg8[%c0_36, %c0_37] : memref<1x32xf32, #tpu.memory_space<vmem>>, vector<1x32xf32>
    %124 = vector.broadcast %123 : vector<1x32xf32> to vector<16x32xf32>
    %125 = arith.addf %122, %124 : vector<16x32xf32>
    %c0_38 = arith.constant 0 : index
    %c0_39 = arith.constant 0 : index
    %126 = vector.load %arg9[%c0_38, %c0_39] : memref<1x32xf32, #tpu.memory_space<vmem>>, vector<1x32xf32>
    %c0_40 = arith.constant 0 : index
    %c0_41 = arith.constant 0 : index
    %127 = vector.load %arg10[%c0_40, %c0_41] : memref<1x32xf32, #tpu.memory_space<vmem>>, vector<1x32xf32>
    %cst_42 = arith.constant dense<0.000000e+00> : vector<16xf32>
    %128 = vector.multi_reduction <add>, %125, %cst_42 [1] : vector<16x32xf32> to vector<16xf32>
    %129 = vector.shape_cast %128 : vector<16xf32> to vector<16x1xf32>
    %cst_43 = arith.constant 3.200000e+01 : f32
    %130 = vector.broadcast %cst_43 : f32 to vector<16x1xf32>
    %131 = arith.divf %129, %130 : vector<16x1xf32>
    %132 = vector.broadcast %131 : vector<16x1xf32> to vector<16x32xf32>
    %133 = arith.subf %125, %132 : vector<16x32xf32>
    %134 = arith.mulf %133, %133 : vector<16x32xf32>
    %cst_44 = arith.constant dense<0.000000e+00> : vector<16xf32>
    %135 = vector.multi_reduction <add>, %134, %cst_44 [1] : vector<16x32xf32> to vector<16xf32>
    %136 = vector.shape_cast %135 : vector<16xf32> to vector<16x1xf32>
    %cst_45 = arith.constant 3.200000e+01 : f32
    %137 = vector.broadcast %cst_45 : f32 to vector<16x1xf32>
    %138 = arith.divf %136, %137 : vector<16x1xf32>
    %139 = vector.broadcast %131 : vector<16x1xf32> to vector<16x32xf32>
    %140 = arith.subf %125, %139 : vector<16x32xf32>
    %cst_46 = arith.constant 9.99999974E-6 : f32
    %141 = vector.broadcast %cst_46 : f32 to vector<16x1xf32>
    %142 = arith.addf %138, %141 : vector<16x1xf32>
    %143 = math.rsqrt %142 : vector<16x1xf32>
    %144 = vector.broadcast %143 : vector<16x1xf32> to vector<16x32xf32>
    %145 = arith.mulf %140, %144 : vector<16x32xf32>
    %146 = vector.broadcast %126 : vector<1x32xf32> to vector<16x32xf32>
    %147 = arith.mulf %145, %146 : vector<16x32xf32>
    %148 = vector.broadcast %127 : vector<1x32xf32> to vector<16x32xf32>
    %149 = arith.addf %147, %148 : vector<16x32xf32>
    %c0_47 = arith.constant 0 : index
    %c0_48 = arith.constant 0 : index
    %150 = vector.load %arg11[%c0_47, %c0_48] : memref<32x128xf32, #tpu.memory_space<vmem>>, vector<32x128xf32>
    %cst_49 = arith.constant dense<0.000000e+00> : vector<16x128xf32>
    %151 = tpu.matmul %149, %150, %cst_49 {dimension_numbers = #tpu.dot_dimension_numbers<[1], [0], [0], [1], [0, 0, 1, 1], [], []>} : vector<16x32xf32>, vector<32x128xf32>, vector<16x128xf32> -> vector<16x128xf32>
    %c0_50 = arith.constant 0 : index
    %c0_51 = arith.constant 0 : index
    %152 = vector.load %arg12[%c0_50, %c0_51] : memref<1x128xf32, #tpu.memory_space<vmem>>, vector<1x128xf32>
    %153 = vector.broadcast %152 : vector<1x128xf32> to vector<16x128xf32>
    %154 = arith.addf %151, %153 : vector<16x128xf32>
    %cst_52 = arith.constant 5.000000e-01 : f32
    %155 = vector.broadcast %cst_52 : f32 to vector<16x128xf32>
    %156 = arith.mulf %155, %154 : vector<16x128xf32>
    %cst_53 = arith.constant 4.471500e-02 : f32
    %157 = vector.broadcast %cst_53 : f32 to vector<16x128xf32>
    %158 = arith.mulf %157, %154 : vector<16x128xf32>
    %159 = arith.mulf %158, %154 : vector<16x128xf32>
    %160 = arith.mulf %159, %154 : vector<16x128xf32>
    %161 = arith.addf %154, %160 : vector<16x128xf32>
    %cst_54 = arith.constant 0.797884583 : f32
    %162 = vector.broadcast %cst_54 : f32 to vector<16x128xf32>
    %163 = arith.mulf %162, %161 : vector<16x128xf32>
    %164 = math.tanh %163 : vector<16x128xf32>
    %cst_55 = arith.constant 1.000000e+00 : f32
    %165 = vector.broadcast %cst_55 : f32 to vector<16x128xf32>
    %166 = arith.addf %165, %164 : vector<16x128xf32>
    %167 = arith.mulf %156, %166 : vector<16x128xf32>
    %c0_56 = arith.constant 0 : index
    %c0_57 = arith.constant 0 : index
    %168 = vector.load %arg13[%c0_56, %c0_57] : memref<128x32xf32, #tpu.memory_space<vmem>>, vector<128x32xf32>
    %cst_58 = arith.constant dense<0.000000e+00> : vector<16x32xf32>
    %169 = tpu.matmul %167, %168, %cst_58 {dimension_numbers = #tpu.dot_dimension_numbers<[1], [0], [0], [1], [0, 0, 1, 1], [], []>} : vector<16x128xf32>, vector<128x32xf32>, vector<16x32xf32> -> vector<16x32xf32>
    %c0_59 = arith.constant 0 : index
    %c0_60 = arith.constant 0 : index
    %170 = vector.load %arg14[%c0_59, %c0_60] : memref<1x32xf32, #tpu.memory_space<vmem>>, vector<1x32xf32>
    %171 = vector.broadcast %170 : vector<1x32xf32> to vector<16x32xf32>
    %172 = arith.addf %169, %171 : vector<16x32xf32>
    %173 = arith.addf %125, %172 : vector<16x32xf32>
    %174 = vector.shape_cast %173 : vector<16x32xf32> to vector<2x8x32xf32>
    %c0_61 = arith.constant 0 : index
    %c0_62 = arith.constant 0 : index
    %c0_63 = arith.constant 0 : index
    %175 = vector.load %arg15[%c0_61, %c0_62, %c0_63] : memref<2x8x32xf32, #tpu.memory_space<vmem>>, vector<2x8x32xf32>
    tpu.vector_store %arg15[%c0_61, %c0_62, %c0_63], %174 {strides = array<i32>} : memref<2x8x32xf32, #tpu.memory_space<vmem>>, vector<2x8x32xf32>,
    return
  }
  func.func @transform_0(%arg0: i32) -> (i32, i32, i32) {
    %c0_i32 = arith.constant 0 : i32
    %c0_i32_0 = arith.constant 0 : i32
    %c0_i32_1 = arith.constant 0 : i32
    return %arg0, %c0_i32, %c0_i32_0 : i32, i32, i32
  }
  func.func @transform_1(%arg0: i32) -> (i32, i32) {
    %c0_i32 = arith.constant 0 : i32
    %c0_i32_0 = arith.constant 0 : i32
    %c0_i32_1 = arith.constant 0 : i32
    return %c0_i32, %c0_i32_0 : i32, i32
  }
  func.func @transform_2(%arg0: i32) -> (i32, i32) {
    %c0_i32 = arith.constant 0 : i32
    %c0_i32_0 = arith.constant 0 : i32
    %c0_i32_1 = arith.constant 0 : i32
    return %c0_i32, %c0_i32_0 : i32, i32
  }
  func.func @transform_3(%arg0: i32) -> (i32, i32) {
    %c0_i32 = arith.constant 0 : i32
    %c0_i32_0 = arith.constant 0 : i32
    %c0_i32_1 = arith.constant 0 : i32
    return %c0_i32, %c0_i32_0 : i32, i32
  }
  func.func @transform_4(%arg0: i32) -> (i32, i32) {
    %c0_i32 = arith.constant 0 : i32
    %c0_i32_0 = arith.constant 0 : i32
    %c0_i32_1 = arith.constant 0 : i32
    return %c0_i32, %c0_i32_0 : i32, i32
  }
  func.func @transform_5(%arg0: i32) -> (i32, i32) {
    %c0_i32 = arith.constant 0 : i32
    %c0_i32_0 = arith.constant 0 : i32
    %c0_i32_1 = arith.constant 0 : i32
    return %c0_i32, %c0_i32_0 : i32, i32
  }
  func.func @transform_6(%arg0: i32) -> (i32, i32) {
    %c0_i32 = arith.constant 0 : i32
    %c0_i32_0 = arith.constant 0 : i32
    %c0_i32_1 = arith.constant 0 : i32
    return %c0_i32, %c0_i32_0 : i32, i32
  }
  func.func @transform_7(%arg0: i32) -> (i32, i32) {
    %c0_i32 = arith.constant 0 : i32
    %c0_i32_0 = arith.constant 0 : i32
    %c0_i32_1 = arith.constant 0 : i32
    return %c0_i32, %c0_i32_0 : i32, i32
  }
  func.func @transform_8(%arg0: i32) -> (i32, i32) {
    %c0_i32 = arith.constant 0 : i32
    %c0_i32_0 = arith.constant 0 : i32
    %c0_i32_1 = arith.constant 0 : i32
    return %c0_i32, %c0_i32_0 : i32, i32
  }
  func.func @transform_9(%arg0: i32) -> (i32, i32) {
    %c0_i32 = arith.constant 0 : i32
    %c0_i32_0 = arith.constant 0 : i32
    %c0_i32_1 = arith.constant 0 : i32
    return %c0_i32, %c0_i32_0 : i32, i32
  }
  func.func @transform_10(%arg0: i32) -> (i32, i32) {
    %c0_i32 = arith.constant 0 : i32
    %c0_i32_0 = arith.constant 0 : i32
    %c0_i32_1 = arith.constant 0 : i32
    return %c0_i32, %c0_i32_0 : i32, i32
  }
  func.func @transform_11(%arg0: i32) -> (i32, i32) {
    %c0_i32 = arith.constant 0 : i32
    %c0_i32_0 = arith.constant 0 : i32
    %c0_i32_1 = arith.constant 0 : i32
    return %c0_i32, %c0_i32_0 : i32, i32
  }
  func.func @transform_12(%arg0: i32) -> (i32, i32) {
    %c0_i32 = arith.constant 0 : i32
    %c0_i32_0 = arith.constant 0 : i32
    %c0_i32_1 = arith.constant 0 : i32
    return %c0_i32, %c0_i32_0 : i32, i32
  }
  func.func @transform_13(%arg0: i32) -> (i32, i32) {
    %c0_i32 = arith.constant 0 : i32
    %c0_i32_0 = arith.constant 0 : i32
    %c0_i32_1 = arith.constant 0 : i32
    return %c0_i32, %c0_i32_0 : i32, i32
  }
  func.func @transform_14(%arg0: i32) -> (i32, i32, i32) {
    %c0_i32 = arith.constant 0 : i32
    %c0_i32_0 = arith.constant 0 : i32
    %c0_i32_1 = arith.constant 0 : i32
    return %arg0, %c0_i32, %c0_i32_0 : i32, i32, i32
  }
}

</mosaic_0001>

<bundles_post_ra>
// kernel: tpu_custom_call.1
= control target key start
LH: loop header
LB: loop body
LE: loop exit
PB: predicated region body
PF: predicated region fallthrough
CT: control target
= control target key end

     0   :  { %vm52_vm0 = vcmask 261120   ;;  %s2638_s0 = inlined_call_operand.vmem [shape: f32[2,8,32], index: 0, kind: input, shape index: {}]   ;;  %s2639_s1 = inlined_call_operand.vmem [shape: f32[8,8], index: 1, kind: input, shape index: {}]   ;;  %s2640_s2 = inlined_call_operand.vmem [shape: f32[1,32], index: 2, kind: input, shape index: {}]   ;;  %s2641_s3 = inlined_call_operand.vmem [shape: f32[1,32], index: 3, kind: input, shape index: {}]   ;;  %s2642_s4 = inlined_call_operand.vmem [shape: f32[32,96], index: 4, kind: input, shape index: {}]   ;;  %s2643_s5 = inlined_call_operand.vmem [shape: f32[1,96], index: 5, kind: input, shape index: {}]   ;;  %s2644_s6 = inlined_call_operand.vmem [shape: f32[32,32], index: 6, kind: input, shape index: {}]   ;;  %s2645_s7 = inlined_call_operand.vmem [shape: f32[1,32], index: 7, kind: input, shape index: {}]   ;;  %s2646_s8 = inlined_call_operand.vmem [shape: f32[1,32], index: 8, kind: input, shape index: {}]   ;;  %s2647_s9 = inlined_call_operand.vmem [shape: f32[1,32], index: 9, kind: input, shape index: {}]   ;;  %s2648_s10 = inlined_call_operand.vmem [shape: f32[32,128], index: 10, kind: input, shape index: {}]   ;;  %s2649_s11 = inlined_call_operand.vmem [shape: f32[1,128], index: 11, kind: input, shape index: {}]   ;;  %s2650_s12 = inlined_call_operand.vmem [shape: f32[128,32], index: 12, kind: input, shape index: {}]   ;;  %s2651_s13 = inlined_call_operand.vmem [shape: f32[1,32], index: 13, kind: input, shape index: {}]   ;;  %s2652_s14 = inlined_call_operand.hbm [shape: f32[2,8,32], index: 14, kind: output, shape index: {}]  }
   0x1   :  { %v2342_v0 = vld [vmem:[%s2638_s0] sm:$0xff]  ;;  %v2347_v1 = vld [vmem:[%s2638_s0 + $0x8] sm:$0xff] }
   0x2   :  { %19 = vsyncpa [#allocation3], 0  ;;  %v53_v2 = vsel %vm52_vm0, %v2342_v0, 0.0  ;;  %v56_v3 = vsel %vm52_vm0, %v2347_v1, 0.0  ;;  %v100_v14 = vld [vmem:[%s2642_s4 + $0x18] sm:$0xff]  ;;  %v99_v15 = vld [vmem:[%s2642_s4 + $0x10] sm:$0xff] }
   0x3   :  { %54 = vadd.xlane.f32.xlu0 %v53_v2  ;;  %2014 = vmatprep.subr.mxu1 %v100_v14  ;;  %v98_v16 = vld [vmem:[%s2642_s4 + $0x8] sm:$0xff]  ;;  %v97_v17 = vld [vmem:[%s2642_s4] sm:$0xff]  ;;  %v2246_v34 = vmov 0.0   ;;  %vm2247_vm1 = vmmov 0   ;;  %s2248_s4 = smov 96   ;;  %vm192_vm2 = vcmask 64512  }
   0x4   :  { %2015 = vmatpush3.msra.mxu1 %v100_v14  ;;  %v1908_v25 = vld [vmem:[%s2640_s2] ss:$0 sm:$0xff]  ;;  %2035 = vmatprep.subr.mxu0 %v2246_v34  ;;  %s2249_s29 = smov 64   ;;  %s2250_s30 = smov 88   ;;  %vm1537_vm3 = vcmask 195584   ;;  %vm1534_vm4 = vcmask 130048  }
   0x5   :  { %2016 = vmatprep.subr.mxu1 %v99_v15  ;;  %v1909_v27 = vld [vmem:[%s2641_s3] ss:$0 sm:$0xff]  ;;  %2037 = vmatprep.mubr.msk.f32.mxu0 %vm2247_vm1, %v2246_v34  ;;  %s2252_s15 = smov 56   ;;  %s2253_s16 = smov 80  }
   0x6   :  { %2017 = vmatpush3.msra.mxu1 %v99_v15  ;;  %v1910_v35 = vld [vmem:[%s2643_s5] ss:$0 sm:$0xff]  ;;  %s2254_s0 = smov 112   ;;  %s2255_s17 = smov 48  }
   0x7   :  { %57 = vadd.xlane.f32.xlu0 %v56_v3  ;;  %2018 = vmatprep.subr.mxu1 %v98_v16  ;;  %v2407_v42 = vld [vmem:[%s2639_s1] sm:$0xff]  ;;  %s2251_s1 = smov 120   ;;  %s2256_s18 = smov 72  }
   0x8   :  { %2019 = vmatpush3.msra.mxu1 %v98_v16  ;;  %s2257_s19 = smov 104   ;;  %s2258_s20 = smov 40  }
   0x9   :  { %2020 = vmatprep.subr.mxu1 %v97_v17  ;;  %s2259_s21 = smov 8   ;;  %s2260_s22 = smov 16  }
   0xa   :  { %2021 = vmatpush3.msra.mxu1 %v97_v17  ;;  %s2261_s5 = smov 24   ;;  %s2262_s2 = smov [#allocation2]  }
   0xb   :  { %2025 = vmatprep.subr.mxu1 %v2246_v34  ;;  %s1897_s3 = sshll.u32 %s2262_s2, 4  ;;  %s1898_s3 = int_to_ptr.vmem [resolvable:$true] %s1897_s3 }
   0xc   :  { %p2229_p1 = scmp.lt.s32.totalorder %s1898_s3, %s1898_s3 }
  0x8c   :  { %v55_v4 = vpop.xlane.xlu0 %54 }
  0x8d   :  { %v60_v5 = vmul.f32 0.03125, %v55_v4 }
  0x8f   :  { %v62_v6 = vsub.f32 %v2342_v0, %v60_v5 }
  0x90   :  { %v58_v7 = vpop.xlane.xlu0 %57 }
  0x91   :  { %v61_v8 = vmul.f32 0.03125, %v58_v7  ;;  %v64_v9 = vmul.f32 %v62_v6, %v62_v6 }
  0x93   :  { %v63_v10 = vsub.f32 %v2347_v1, %v61_v8  ;;  %v66_v11 = vsel %vm52_vm0, %v64_v9, 0.0 }
  0x94   :  { %67 = vadd.xlane.f32.xlu1 %v66_v11 }
  0x95   :  { %v65_v12 = vmul.f32 %v63_v10, %v63_v10 }
  0x97   :  { %v69_v13 = vsel %vm52_vm0, %v65_v12, 0.0 }
  0x98   :  { %70 = vadd.xlane.f32.xlu1 %v69_v13 }
 0x11d   :  { %v68_v18 = vpop.xlane.xlu1 %67 }
 0x11e   :  { %v72_v19 = vmul.f32 0.03125, %v68_v18 }
 0x120   :  { %v74_v20 = vadd.f32 1e-05, %v72_v19 }
 0x121   :  { %v71_v21 = vpop.xlane.xlu1 %70 }
 0x122   :  { %2180 = vrsqrt.f32 %v74_v20  ;;  %v73_v22 = vmul.f32 0.03125, %v71_v21 }
 0x124   :  { %v75_v23 = vadd.f32 1e-05, %v73_v22 }
 0x126   :  { %2182 = vrsqrt.f32 %v75_v23 }
 0x12f   :  { %v2181_v24 = vpop.eup %2180 }
 0x130   :  { %v78_v26 = vmul.f32 %v2181_v24, %v62_v6 }
 0x132   :  { %v86_v28 = vmul.f32 %v1908_v25, %v78_v26 }
 0x133   :  { %v2183_v29 = vpop.eup %2182 }
 0x134   :  { %v79_v30 = vmul.f32 %v2183_v29, %v63_v10  ;;  %v94_v31 = vadd.f32 %v1909_v27, %v86_v28 }
 0x136   :  { %v87_v32 = vmul.f32 %v1908_v25, %v79_v30  ;;  %2022 = vmatprep.mubr.msk.f32.mxu1 %vm52_vm0, %v94_v31 }
 0x138   :  { %v95_v33 = vadd.f32 %v1909_v27, %v87_v32 }
 0x13a   :  { %2023 = vmatmul.mubr.msk.f32.vlgmr.msra.gmra.mxu1 %vm52_vm0, %v95_v33 }
 0x13b   :  { %2027 = vmatprep.mubr.msk.f32.mxu1 %vm2247_vm1, %v2246_v34 }
 0x1fa   :  { %v2024_v36 = vpop.f32.mrf.mxu1 }
 0x1fb   :  { %v2386_v37 = vadd.f32 %v2024_v36, %v1910_v35 }
 0x1fc   :  { %v180_v38 = vpop.f32.mrf.mxu1 }
 0x1fd   :  { %v2388_v39 = vadd.f32 %v1910_v35, %v180_v38  ;;  %268 = vrot.lane.b32.xlu1 %v2386_v37, %s2248_s4 }
 0x1ff   :  { %190 = vrot.lane.b32.xlu0 %v2388_v39, %s2248_s4  ;;  %s2224_s4 = scalar_lea.vmem %s1898_s3, 256 }
 0x200   :  { %p2225_p0 = scmp.ne.s32.totalorder %s1898_s3, %s2224_s4  ;;  %p2230_p2 = scmp.lt.s32.totalorder %s2224_s4, %s2224_s4 }
 0x202   :  { %p2231_p3 = por %p2230_p2, %p2229_p1 }
 0x204   :  { %p2232_p4 = pnand %p2231_p3, %p2225_p0 }
 0x26f   :  { %v269_v41 = vpop.permute.xlu1 %268 }
 0x271   :  { %v191_v40 = vpop.permute.xlu0 %190 }
 0x272   :  { %2026 = vmatpush3.xpose.msk.msra.mxu1 %vm192_vm2, %v191_v40 }
 0x273   :  { %2030 = vmatprep.subr.mxu1 %v2246_v34 }
 0x275   :  { %2028 = vmatmul.mubr.msk.f32.vlgmr.msra.gmra.mxu1 %vm192_vm2, %v2388_v39 }
 0x276   :  { %2031 = vmatpush3.xpose.msk.msra.mxu1 %vm192_vm2, %v269_v41  ;;  %2032 = vmatprep.mubr.msk.f32.mxu1 %vm2247_vm1, %v2246_v34 }
 0x277   :  { %2040 = vmatprep.subr.mxu1 %v2246_v34 }
 0x279   :  { %2033 = vmatmul.mubr.msk.f32.vlgmr.msra.gmra.mxu1 %vm192_vm2, %v2386_v37 }
 0x27a   :  { %2042 = vmatprep.mubr.msk.f32.mxu1 %vm2247_vm1, %v2246_v34 }
 0x335   :  { %v263_v43 = vpop.f32.mrf.mxu1 }
 0x336   :  { %v264_v44 = vadd.f32 %v263_v43, %v2407_v42 }
 0x337   :  { %v2029_v45 = vpop.f32.mrf.mxu1 }
 0x338   :  { %v344_v46 = vsel %vm192_vm2, %v264_v44, -inf }
 0x339   :  { %345 = vmax.xlane.f32.xlu1 %v344_v46  ;;  %v340_v47 = vpop.f32.mrf.mxu1 }
 0x33a   :  { %v341_v48 = vadd.f32 %v340_v47, %v2407_v42 }
 0x33b   :  { %v2034_v49 = vpop.f32.mrf.mxu1 }
 0x33c   :  { %v347_v50 = vsel %vm192_vm2, %v341_v48, -inf }
 0x33d   :  { %348 = vmax.xlane.f32.xlu0 %v347_v50 }
 0x34a   :  { %442 = vrot.lane.b32.xlu1 %v2386_v37, %s2249_s29 }
 0x34e   :  { %520 = vrot.lane.b32.xlu1 %v2388_v39, %s2250_s30 }
 0x352   :  { %598 = vrot.lane.b32.xlu1 %v2386_v37, %s2250_s30 }
 0x3c2   :  { %v346_v51 = vpop.xlane.xlu1 %345 }
 0x3c3   :  { %v350_v52 = vsub.f32 %v264_v44, %v346_v51 }
 0x3c5   :  { %v352_v53 = vmul.f32 1.442695, %v350_v52 }
 0x3c6   :  { %v443_v54 = vpop.permute.xlu1 %442  ;;  %v349_v55 = vpop.xlane.xlu0 %348 }
 0x3c7   :  { %2184 = vpow2.f32 %v352_v53  ;;  %v351_v56 = vsub.f32 %v341_v48, %v349_v55  ;;  %2041 = vmatpush3.msra.mxu1 %v443_v54 }
 0x3c8   :  { %2050 = vmatprep.subr.mxu1 %v2246_v34 }
 0x3c9   :  { %v354_v57 = vmul.f32 1.442695, %v351_v56 }
 0x3ca   :  { %v521_v62 = vpop.permute.xlu1 %520 }
 0x3cb   :  { %2186 = vpow2.f32 %v354_v57 }
 0x3ce   :  { %v599_v63 = vpop.permute.xlu1 %598 }
 0x3d4   :  { %v2185_v58 = vpop.eup %2184 }
 0x3d5   :  { %v356_v59 = vsel %vm192_vm2, %v2185_v58, 0.0 }
 0x3d6   :  { %357 = vadd.xlane.f32.xlu0 %v356_v59 }
 0x3d8   :  { %v2187_v60 = vpop.eup %2186 }
 0x3d9   :  { %v359_v61 = vsel %vm192_vm2, %v2187_v60, 0.0 }
 0x3da   :  { %360 = vadd.xlane.f32.xlu1 %v359_v61 }
 0x3eb   :  { %596 = vrot.lane.b32.xlu1 %v2386_v37, %s2251_s1 }
 0x3ec   :  { %366 = vrot.lane.b32.xlu0 %v2388_v39, %s2249_s29 }
 0x3f0   :  { %518 = vrot.lane.b32.xlu0 %v2388_v39, %s2251_s1 }
 0x45f   :  { %v358_v2 = vpop.xlane.xlu0 %357 }
 0x460   :  { %2188 = vrcp.f32 %v358_v2 }
 0x463   :  { %v361_v3 = vpop.xlane.xlu1 %360  ;;  %v367_v4 = vpop.permute.xlu0 %366 }
 0x464   :  { %2190 = vrcp.f32 %v361_v3  ;;  %2036 = vmatpush3.msra.mxu0 %v367_v4 }
 0x465   :  { %2045 = vmatprep.subr.mxu0 %v2246_v34 }
 0x467   :  { %v519_v9 = vpop.permute.xlu0 %518  ;;  %v597_v10 = vpop.permute.xlu1 %596 }
 0x46d   :  { %v2189_v5 = vpop.eup %2188 }
 0x46e   :  { %v363_v6 = vmul.f32 %v2189_v5, %v2185_v58 }
 0x470   :  { %2038 = vmatmul.mubr.msk.f32.vlgmr.msra.gmra.mxu0 %vm192_vm2, %v363_v6 }
 0x471   :  { %v2191_v7 = vpop.eup %2190  ;;  %2046 = vmatpush3.xpose.msk.msra.mxu0 %vm192_vm2, %v521_v62  ;;  %2047 = vmatprep.mubr.msk.f32.mxu0 %vm2247_vm1, %v2246_v34 }
 0x472   :  { %v365_v8 = vmul.f32 %v2191_v7, %v2187_v60  ;;  %2055 = vmatprep.subr.mxu0 %v2246_v34 }
 0x474   :  { %2043 = vmatmul.mubr.msk.f32.vlgmr.msra.gmra.mxu1 %vm192_vm2, %v365_v8  ;;  %2048 = vmatmul.mubr.msk.f32.vlgmr.msra.gmra.mxu0 %vm192_vm2, %v519_v9 }
 0x475   :  { %2051 = vmatpush3.xpose.msk.msra.mxu1 %vm192_vm2, %v599_v63  ;;  %2052 = vmatprep.mubr.msk.f32.mxu1 %vm2247_vm1, %v2246_v34 }
 0x476   :  { %2060 = vmatprep.subr.mxu1 %v2246_v34  ;;  %2057 = vmatprep.mubr.msk.f32.mxu0 %vm2247_vm1, %v2246_v34 }
 0x478   :  { %2053 = vmatmul.mubr.msk.f32.vlgmr.msra.gmra.mxu1 %vm192_vm2, %v597_v10 }
 0x479   :  { %2062 = vmatprep.mubr.msk.f32.mxu1 %vm2247_vm1, %v2246_v34 }
 0x530   :  { %v2439_v11 = vpop.f32.mrf.mxu0 }
 0x532   :  { %v2039_v12 = vpop.f32.mrf.mxu0 }
 0x534   :  { %v2441_v13 = vpop.f32.mrf.mxu1  ;;  %v592_v14 = vpop.f32.mrf.mxu0 }
 0x535   :  { %v593_v15 = vadd.f32 %v592_v14, %v2407_v42 }
 0x536   :  { %v2044_v16 = vpop.f32.mrf.mxu1  ;;  %v2049_v17 = vpop.f32.mrf.mxu0 }
 0x537   :  { %v674_v18 = vsel %vm192_vm2, %v593_v15, -inf }
 0x538   :  { %675 = vmax.xlane.f32.xlu0 %v674_v18  ;;  %v670_v19 = vpop.f32.mrf.mxu1 }
 0x539   :  { %v671_v20 = vadd.f32 %v670_v19, %v2407_v42 }
 0x53a   :  { %v2054_v21 = vpop.f32.mrf.mxu1 }
 0x53b   :  { %v677_v22 = vsel %vm192_vm2, %v671_v20, -inf }
 0x53c   :  { %678 = vmax.xlane.f32.xlu1 %v677_v22 }
 0x54d   :  { %772 = vrot.lane.b32.xlu1 %v2386_v37, %s2252_s15 }
 0x54e   :  { %696 = vrot.lane.b32.xlu0 %v2388_v39, %s2252_s15 }
 0x551   :  { %850 = vrot.lane.b32.xlu1 %v2388_v39, %s2253_s16 }
 0x555   :  { %928 = vrot.lane.b32.xlu1 %v2386_v37, %s2253_s16 }
 0x559   :  { %926 = vrot.lane.b32.xlu1 %v2386_v37, %s2254_s0 }
 0x5c1   :  { %v676_v23 = vpop.xlane.xlu0 %675 }
 0x5c2   :  { %v680_v24 = vsub.f32 %v593_v15, %v676_v23 }
 0x5c4   :  { %v682_v25 = vmul.f32 1.442695, %v680_v24 }
 0x5c5   :  { %v697_v26 = vpop.permute.xlu0 %696  ;;  %v679_v27 = vpop.xlane.xlu1 %678 }
 0x5c6   :  { %2192 = vpow2.f32 %v682_v25  ;;  %v681_v28 = vsub.f32 %v671_v20, %v679_v27  ;;  %2056 = vmatpush3.msra.mxu0 %v697_v26 }
 0x5c7   :  { %2065 = vmatprep.subr.mxu0 %v2246_v34 }
 0x5c8   :  { %v684_v29 = vmul.f32 1.442695, %v681_v28 }
 0x5c9   :  { %v773_v30 = vpop.permute.xlu1 %772 }
 0x5ca   :  { %2194 = vpow2.f32 %v684_v29  ;;  %2061 = vmatpush3.msra.mxu1 %v773_v30 }
 0x5cb   :  { %2070 = vmatprep.subr.mxu1 %v2246_v34 }
 0x5cd   :  { %v851_v40 = vpop.permute.xlu1 %850 }
 0x5d1   :  { %v929_v45 = vpop.permute.xlu1 %928 }
 0x5d3   :  { %v2193_v31 = vpop.eup %2192 }
 0x5d4   :  { %v686_v32 = vsel %vm192_vm2, %v2193_v31, 0.0 }
 0x5d5   :  { %687 = vadd.xlane.f32.xlu0 %v686_v32  ;;  %v927_v48 = vpop.permute.xlu1 %926 }
 0x5d7   :  { %v2195_v33 = vpop.eup %2194 }
 0x5d8   :  { %v689_v35 = vsel %vm192_vm2, %v2195_v33, 0.0 }
 0x5d9   :  { %690 = vadd.xlane.f32.xlu0 %v689_v35 }
 0x5ef   :  { %848 = vrot.lane.b32.xlu0 %v2388_v39, %s2254_s0 }
 0x65e   :  { %v688_v36 = vpop.xlane.xlu0 %687 }
 0x65f   :  { %2196 = vrcp.f32 %v688_v36 }
 0x662   :  { %v691_v38 = vpop.xlane.xlu0 %690 }
 0x663   :  { %2198 = vrcp.f32 %v691_v38 }
 0x666   :  { %v849_v47 = vpop.permute.xlu0 %848 }
 0x66c   :  { %v2197_v41 = vpop.eup %2196 }
 0x66d   :  { %v693_v43 = vmul.f32 %v2197_v41, %v2193_v31 }
 0x66f   :  { %2058 = vmatmul.mubr.msk.f32.vlgmr.msra.gmra.mxu0 %vm192_vm2, %v693_v43 }
 0x670   :  { %v2199_v44 = vpop.eup %2198  ;;  %2066 = vmatpush3.xpose.msk.msra.mxu0 %vm192_vm2, %v851_v40  ;;  %2067 = vmatprep.mubr.msk.f32.mxu0 %vm2247_vm1, %v2246_v34 }
 0x671   :  { %v695_v46 = vmul.f32 %v2199_v44, %v2195_v33  ;;  %2075 = vmatprep.subr.mxu0 %v2246_v34 }
 0x673   :  { %2063 = vmatmul.mubr.msk.f32.vlgmr.msra.gmra.mxu1 %vm192_vm2, %v695_v46  ;;  %2068 = vmatmul.mubr.msk.f32.vlgmr.msra.gmra.mxu0 %vm192_vm2, %v849_v47 }
 0x674   :  { %2071 = vmatpush3.xpose.msk.msra.mxu1 %vm192_vm2, %v929_v45  ;;  %2072 = vmatprep.mubr.msk.f32.mxu1 %vm2247_vm1, %v2246_v34 }
 0x675   :  { %2080 = vmatprep.subr.mxu1 %v2246_v34  ;;  %2077 = vmatprep.mubr.msk.f32.mxu0 %vm2247_vm1, %v2246_v34 }
 0x677   :  { %2073 = vmatmul.mubr.msk.f32.vlgmr.msra.gmra.mxu1 %vm192_vm2, %v927_v48 }
 0x678   :  { %2082 = vmatprep.mubr.msk.f32.mxu1 %vm2247_vm1, %v2246_v34 }
 0x72f   :  { %v2473_v49 = vpop.f32.mrf.mxu0 }
 0x731   :  { %v2059_v50 = vpop.f32.mrf.mxu0 }
 0x733   :  { %v2475_v51 = vpop.f32.mrf.mxu1  ;;  %v922_v52 = vpop.f32.mrf.mxu0 }
 0x734   :  { %v923_v53 = vadd.f32 %v922_v52, %v2407_v42 }
 0x735   :  { %v2064_v54 = vpop.f32.mrf.mxu1  ;;  %v2069_v55 = vpop.f32.mrf.mxu0 }
 0x736   :  { %v1004_v56 = vsel %vm192_vm2, %v923_v53, -inf  ;;  %v1543_v54 = vld [vmem:[%s2644_s6 + $0x18] sm:$0xff]  ;;  %v1541_v55 = vld [vmem:[%s2644_s6 + $0x8] sm:$0xff] }
 0x737   :  { %1005 = vmax.xlane.f32.xlu0 %v1004_v56  ;;  %v1000_v57 = vpop.f32.mrf.mxu1  ;;  %v1540_v56 = vld [vmem:[%s2644_s6] sm:$0xff] }
 0x738   :  { %v1001_v58 = vadd.f32 %v1000_v57, %v2407_v42 }
 0x739   :  { %v2074_v59 = vpop.f32.mrf.mxu1 }
 0x73a   :  { %v1007_v60 = vsel %vm192_vm2, %v1001_v58, -inf }
 0x73b   :  { %1008 = vmax.xlane.f32.xlu1 %v1007_v60 }
 0x74c   :  { %1102 = vrot.lane.b32.xlu1 %v2386_v37, %s2255_s17 }
 0x74d   :  { %1026 = vrot.lane.b32.xlu0 %v2388_v39, %s2255_s17 }
 0x750   :  { %1180 = vrot.lane.b32.xlu1 %v2388_v39, %s2256_s18 }
 0x754   :  { %1258 = vrot.lane.b32.xlu1 %v2386_v37, %s2256_s18 }
 0x758   :  { %1256 = vrot.lane.b32.xlu1 %v2386_v37, %s2257_s19 }
 0x7c0   :  { %v1006_v61 = vpop.xlane.xlu0 %1005 }
 0x7c1   :  { %v1010_v62 = vsub.f32 %v923_v53, %v1006_v61 }
 0x7c3   :  { %v1012_v63 = vmul.f32 1.442695, %v1010_v62 }
 0x7c4   :  { %v1027_v2 = vpop.permute.xlu0 %1026  ;;  %v1009_v3 = vpop.xlane.xlu1 %1008 }
 0x7c5   :  { %2200 = vpow2.f32 %v1012_v63  ;;  %v1011_v4 = vsub.f32 %v1001_v58, %v1009_v3  ;;  %2076 = vmatpush3.msra.mxu0 %v1027_v2 }
 0x7c6   :  { %2085 = vmatprep.subr.mxu0 %v2246_v34 }
 0x7c7   :  { %v1014_v5 = vmul.f32 1.442695, %v1011_v4 }
 0x7c8   :  { %v1103_v6 = vpop.permute.xlu1 %1102 }
 0x7c9   :  { %2202 = vpow2.f32 %v1014_v5  ;;  %2081 = vmatpush3.msra.mxu1 %v1103_v6 }
 0x7ca   :  { %2090 = vmatprep.subr.mxu1 %v2246_v34 }
 0x7cc   :  { %v1181_v15 = vpop.permute.xlu1 %1180 }
 0x7d0   :  { %v1259_v19 = vpop.permute.xlu1 %1258 }
 0x7d2   :  { %v2201_v7 = vpop.eup %2200 }
 0x7d3   :  { %v1016_v8 = vsel %vm192_vm2, %v2201_v7, 0.0 }
 0x7d4   :  { %1017 = vadd.xlane.f32.xlu0 %v1016_v8  ;;  %v1257_v22 = vpop.permute.xlu1 %1256 }
 0x7d6   :  { %v2203_v9 = vpop.eup %2202 }
 0x7d7   :  { %v1019_v10 = vsel %vm192_vm2, %v2203_v9, 0.0 }
 0x7d8   :  { %1020 = vadd.xlane.f32.xlu0 %v1019_v10 }
 0x7ee   :  { %1178 = vrot.lane.b32.xlu0 %v2388_v39, %s2257_s19 }
 0x85d   :  { %v1018_v12 = vpop.xlane.xlu0 %1017 }
 0x85e   :  { %2204 = vrcp.f32 %v1018_v12 }
 0x861   :  { %v1021_v14 = vpop.xlane.xlu0 %1020 }
 0x862   :  { %2206 = vrcp.f32 %v1021_v14 }
 0x865   :  { %v1179_v21 = vpop.permute.xlu0 %1178 }
 0x86b   :  { %v2205_v16 = vpop.eup %2204 }
 0x86c   :  { %v1023_v17 = vmul.f32 %v2205_v16, %v2201_v7 }
 0x86e   :  { %2078 = vmatmul.mubr.msk.f32.vlgmr.msra.gmra.mxu0 %vm192_vm2, %v1023_v17 }
 0x86f   :  { %v2207_v18 = vpop.eup %2206  ;;  %2086 = vmatpush3.xpose.msk.msra.mxu0 %vm192_vm2, %v1181_v15  ;;  %2087 = vmatprep.mubr.msk.f32.mxu0 %vm2247_vm1, %v2246_v34 }
 0x870   :  { %v1025_v20 = vmul.f32 %v2207_v18, %v2203_v9  ;;  %2095 = vmatprep.subr.mxu0 %v2246_v34 }
 0x872   :  { %2083 = vmatmul.mubr.msk.f32.vlgmr.msra.gmra.mxu1 %vm192_vm2, %v1025_v20  ;;  %2088 = vmatmul.mubr.msk.f32.vlgmr.msra.gmra.mxu0 %vm192_vm2, %v1179_v21 }
 0x873   :  { %2091 = vmatpush3.xpose.msk.msra.mxu1 %vm192_vm2, %v1259_v19  ;;  %2092 = vmatprep.mubr.msk.f32.mxu1 %vm2247_vm1, %v2246_v34 }
 0x874   :  { %2100 = vmatprep.subr.mxu1 %v2246_v34  ;;  %2097 = vmatprep.mubr.msk.f32.mxu0 %vm2247_vm1, %v2246_v34 }
 0x876   :  { %2093 = vmatmul.mubr.msk.f32.vlgmr.msra.gmra.mxu1 %vm192_vm2, %v1257_v22 }
 0x877   :  { %2102 = vmatprep.mubr.msk.f32.mxu1 %vm2247_vm1, %v2246_v34 }
 0x92e   :  { %v1098_v23 = vpop.f32.mrf.mxu0 }
 0x930   :  { %v2079_v24 = vpop.f32.mrf.mxu0 }
 0x932   :  { %v1174_v25 = vpop.f32.mrf.mxu1  ;;  %v1252_v26 = vpop.f32.mrf.mxu0 }
 0x933   :  { %v1253_v27 = vadd.f32 %v1252_v26, %v2407_v42 }
 0x934   :  { %v2084_v28 = vpop.f32.mrf.mxu1  ;;  %v2089_v29 = vpop.f32.mrf.mxu0 }
 0x935   :  { %v1334_v30 = vsel %vm192_vm2, %v1253_v27, -inf  ;;  %v1683_v28 = vld [vmem:[%s2648_s10 + $0x18] sm:$0xff]  ;;  %v1682_v29 = vld [vmem:[%s2648_s10 + $0x10] sm:$0xff] }
 0x936   :  { %1335 = vmax.xlane.f32.xlu0 %v1334_v30  ;;  %v1330_v31 = vpop.f32.mrf.mxu1  ;;  %v1681_v30 = vld [vmem:[%s2648_s10 + $0x8] sm:$0xff] }
 0x937   :  { %v1331_v32 = vadd.f32 %v1330_v31, %v2407_v42  ;;  %v1680_v31 = vld [vmem:[%s2648_s10] sm:$0xff] }
 0x938   :  { %v2094_v33 = vpop.f32.mrf.mxu1 }
 0x939   :  { %v1337_v35 = vsel %vm192_vm2, %v1331_v32, -inf }
 0x93a   :  { %1338 = vmax.xlane.f32.xlu1 %v1337_v35 }
 0x94b   :  { %1432 = vrot.lane.b32.xlu1 %v2386_v37, %s2258_s20 }
 0x94f   :  { %1510 = vrot.lane.b32.xlu1 %v2473_v49, %s2259_s21 }
 0x953   :  { %1512 = vrot.lane.b32.xlu1 %v2475_v51, %s2259_s21 }
 0x957   :  { %1520 = vrot.lane.b32.xlu1 %v1174_v25, %s2260_s22 }
 0x9bf   :  { %v1336_v34 = vpop.xlane.xlu0 %1335 }
 0x9c0   :  { %v1340_v36 = vsub.f32 %v1253_v27, %v1336_v34 }
 0x9c2   :  { %v1342_v38 = vmul.f32 1.442695, %v1340_v36 }
 0x9c3   :  { %v1339_v42 = vpop.xlane.xlu1 %1338 }
 0x9c4   :  { %2208 = vpow2.f32 %v1342_v38  ;;  %v1341_v40 = vsub.f32 %v1331_v32, %v1339_v42 }
 0x9c6   :  { %v1344_v41 = vmul.f32 1.442695, %v1341_v40  ;;  %v1940_v40 = vld [vmem:[%s2646_s8] ss:$0 sm:$0xff] }
 0x9c7   :  { %v1433_v43 = vpop.permute.xlu1 %1432 }
 0x9c8   :  { %2210 = vpow2.f32 %v1344_v41  ;;  %2101 = vmatpush3.msra.mxu1 %v1433_v43  ;;  %v1941_v43 = vld [vmem:[%s2647_s9] ss:$0 sm:$0xff] }
 0x9c9   :  { %2105 = vmatprep.subr.mxu1 %v1543_v54 }
 0x9cb   :  { %v1511_v61 = vpop.permute.xlu1 %1510 }
 0x9cc   :  { %v1532_v2 = vsel %vm192_vm2, %v2439_v11, %v1511_v61  ;;  %v1939_v11 = vld [vmem:[%s2645_s7] ss:$0 sm:$0xff]  ;;  %v1792_v61 = vld [vmem:[%s2650_s12 + $0x10] sm:$0xff] }
 0x9cf   :  { %v1513_v62 = vpop.permute.xlu1 %1512 }
 0x9d0   :  { %v1533_v7 = vsel %vm192_vm2, %v2441_v13, %v1513_v62  ;;  %v1791_v62 = vld [vmem:[%s2650_s12 + $0x8] sm:$0xff] }
 0x9d1   :  { %v2209_v37 = vpop.eup %2208 }
 0x9d2   :  { %v1346_v44 = vsel %vm192_vm2, %v2209_v37, 0.0 }
 0x9d3   :  { %1347 = vadd.xlane.f32.xlu0 %v1346_v44  ;;  %v1521_v3 = vpop.permute.xlu1 %1520 }
 0x9d4   :  { %v1536_v8 = vsel %vm1534_vm4, %v1533_v7, %v1521_v3 }
 0x9d5   :  { %v2211_v45 = vpop.eup %2210 }
 0x9d6   :  { %v1349_v46 = vsel %vm192_vm2, %v2211_v45, 0.0 }
 0x9d7   :  { %1350 = vadd.xlane.f32.xlu0 %v1349_v46 }
 0x9ed   :  { %1356 = vrot.lane.b32.xlu0 %v2388_v39, %s2258_s20  ;;  %v1542_v39 = vld [vmem:[%s2644_s6 + $0x10] sm:$0xff] }
 0x9f1   :  { %1518 = vrot.lane.b32.xlu0 %v1098_v23, %s2260_s22 }
 0xa5c   :  { %v1348_v47 = vpop.xlane.xlu0 %1347 }
 0xa5d   :  { %2212 = vrcp.f32 %v1348_v47 }
 0xa60   :  { %v1351_v48 = vpop.xlane.xlu0 %1350 }
 0xa61   :  { %2214 = vrcp.f32 %v1351_v48 }
 0xa64   :  { %v1357_v49 = vpop.permute.xlu0 %1356 }
 0xa65   :  { %2096 = vmatpush3.msra.mxu0 %v1357_v49  ;;  %v1805_v49 = vld [vmem:[%s2650_s12 + $0x78] sm:$0xff] }
 0xa66   :  { %2127 = vmatprep.subr.mxu0 %v1805_v49 }
 0xa68   :  { %v1519_v63 = vpop.permute.xlu0 %1518 }
 0xa69   :  { %v1535_v4 = vsel %vm1534_vm4, %v1532_v2, %v1519_v63  ;;  %v1790_v63 = vld [vmem:[%s2650_s12] sm:$0xff] }
 0xa6a   :  { %v2213_v50 = vpop.eup %2212  ;;  %v1942_v2 = vld [vmem:[%s2649_s11] ss:$0 sm:$0xff] }
 0xa6b   :  { %v1353_v51 = vmul.f32 %v2213_v50, %v2209_v37  ;;  %v1804_v50 = vld [vmem:[%s2650_s12 + $0x70] sm:$0xff] }
 0xa6d   :  { %2098 = vmatmul.mubr.msk.f32.vlgmr.msra.gmra.mxu0 %vm192_vm2, %v1353_v51  ;;  %v1803_v51 = vld [vmem:[%s2650_s12 + $0x68] sm:$0xff] }
 0xa6e   :  { %v2215_v52 = vpop.eup %2214  ;;  %2128 = vmatpush3.msra.mxu0 %v1805_v49 }
 0xa6f   :  { %v1355_v53 = vmul.f32 %v2215_v52, %v2211_v45  ;;  %2129 = vmatprep.subr.mxu0 %v1804_v50  ;;  %v1802_v52 = vld [vmem:[%s2650_s12 + $0x60] sm:$0xff] }
 0xa70   :  { %2130 = vmatpush3.msra.mxu0 %v1804_v50 }
 0xa71   :  { %2103 = vmatmul.mubr.msk.f32.vlgmr.msra.gmra.mxu1 %vm192_vm2, %v1355_v53  ;;  %2131 = vmatprep.subr.mxu0 %v1803_v51  ;;  %v1801_v53 = vld [vmem:[%s2650_s12 + $0x58] sm:$0xff] }
 0xa72   :  { %2106 = vmatpush3.msra.mxu1 %v1543_v54  ;;  %2132 = vmatpush3.msra.mxu0 %v1803_v51  ;;  %v1800_v54 = vld [vmem:[%s2650_s12 + $0x50] sm:$0xff] }
 0xa73   :  { %2107 = vmatprep.subr.mxu1 %v1542_v39  ;;  %2133 = vmatprep.subr.mxu0 %v1802_v52 }
 0xa74   :  { %2108 = vmatpush3.msra.mxu1 %v1542_v39  ;;  %2134 = vmatpush3.msra.mxu0 %v1802_v52  ;;  %v1799_v39 = vld [vmem:[%s2650_s12 + $0x48] sm:$0xff] }
 0xa75   :  { %2109 = vmatprep.subr.mxu1 %v1541_v55  ;;  %2135 = vmatprep.subr.mxu0 %v1801_v53 }
 0xa76   :  { %2110 = vmatpush3.msra.mxu1 %v1541_v55  ;;  %2136 = vmatpush3.msra.mxu0 %v1801_v53  ;;  %v1798_v55 = vld [vmem:[%s2650_s12 + $0x40] sm:$0xff] }
 0xa77   :  { %2111 = vmatprep.subr.mxu1 %v1540_v56  ;;  %2137 = vmatprep.subr.mxu0 %v1800_v54 }
 0xa78   :  { %2112 = vmatpush3.msra.mxu1 %v1540_v56  ;;  %2138 = vmatpush3.msra.mxu0 %v1800_v54  ;;  %v1797_v56 = vld [vmem:[%s2650_s12 + $0x38] sm:$0xff] }
 0xa79   :  { %2116 = vmatprep.subr.mxu1 %v1683_v28  ;;  %2139 = vmatprep.subr.mxu0 %v1799_v39 }
 0xa7a   :  { %2140 = vmatpush3.msra.mxu0 %v1799_v39 }
 0xa7b   :  { %2141 = vmatprep.subr.mxu0 %v1798_v55 }
 0xa7c   :  { %2142 = vmatpush3.msra.mxu0 %v1798_v55 }
 0xa7d   :  { %2143 = vmatprep.subr.mxu0 %v1797_v56 }
 0xa7e   :  { %2144 = vmatpush3.msra.mxu0 %v1797_v56 }
 0xb2d   :  { %v1428_v57 = vpop.f32.mrf.mxu0 }
 0xb2e   :  { %1526 = vrot.lane.b32.xlu0 %v1428_v57, %s2261_s5  ;;  %v1796_v57 = vld [vmem:[%s2650_s12 + $0x30] sm:$0xff] }
 0xb2f   :  { %v2099_v58 = vpop.f32.mrf.mxu0  ;;  %2145 = vmatprep.subr.mxu0 %v1796_v57 }
 0xb30   :  { %v1795_v58 = vld [vmem:[%s2650_s12 + $0x28] sm:$0xff]  ;;  %2146 = vmatpush3.msra.mxu0 %v1796_v57 }
 0xb31   :  { %v1504_v59 = vpop.f32.mrf.mxu1  ;;  %2147 = vmatprep.subr.mxu0 %v1795_v58 }
 0xb32   :  { %1528 = vrot.lane.b32.xlu1 %v1504_v59, %s2261_s5  ;;  %v1794_v59 = vld [vmem:[%s2650_s12 + $0x20] sm:$0xff]  ;;  %2148 = vmatpush3.msra.mxu0 %v1795_v58 }
 0xb33   :  { %v2104_v60 = vpop.f32.mrf.mxu1  ;;  %2149 = vmatprep.subr.mxu0 %v1794_v59 }
 0xb34   :  { %v1793_v60 = vld [vmem:[%s2650_s12 + $0x18] sm:$0xff]  ;;  %2150 = vmatpush3.msra.mxu0 %v1794_v59 }
 0xb35   :  { %2151 = vmatprep.subr.mxu0 %v1793_v60 }
 0xb36   :  { %2152 = vmatpush3.msra.mxu0 %v1793_v60 }
 0xb37   :  { %2153 = vmatprep.subr.mxu0 %v1792_v61 }
 0xb38   :  { %2154 = vmatpush3.msra.mxu0 %v1792_v61 }
 0xb39   :  { %2155 = vmatprep.subr.mxu0 %v1791_v62 }
 0xb3a   :  { %2156 = vmatpush3.msra.mxu0 %v1791_v62 }
 0xb3b   :  { %2157 = vmatprep.subr.mxu0 %v1790_v63 }
 0xb3c   :  { %2158 = vmatpush3.msra.mxu0 %v1790_v63 }
 0xba0   :  { %v1527_v5 = vpop.permute.xlu0 %1526 }
 0xba1   :  { %v1538_v6 = vsel %vm1537_vm3, %v1535_v4, %v1527_v5 }
 0xba2   :  { %2113 = vmatprep.mubr.msk.f32.mxu1 %vm52_vm0, %v1538_v6 }
 0xba4   :  { %v1529_v9 = vpop.permute.xlu1 %1528 }
 0xba5   :  { %v1539_v10 = vsel %vm1537_vm3, %v1536_v8, %v1529_v9 }
 0xba6   :  { %2114 = vmatmul.mubr.msk.f32.vlgmr.msra.gmra.mxu1 %vm52_vm0, %v1539_v10 }
 0xba7   :  { %2117 = vmatpush3.msra.mxu1 %v1683_v28 }
 0xba8   :  { %2118 = vmatprep.subr.mxu1 %v1682_v29 }
 0xba9   :  { %2119 = vmatpush3.msra.mxu1 %v1682_v29 }
 0xbaa   :  { %2120 = vmatprep.subr.mxu1 %v1681_v30 }
 0xbab   :  { %2121 = vmatpush3.msra.mxu1 %v1681_v30 }
 0xbac   :  { %2122 = vmatprep.subr.mxu1 %v1680_v31 }
 0xbad   :  { %2123 = vmatpush3.msra.mxu1 %v1680_v31 }
 0xc66   :  { %v2115_v12 = vpop.f32.mrf.mxu1 }
 0xc67   :  { %v1626_v14 = vadd.f32 %v2115_v12, %v2347_v1 }
 0xc68   :  { %v1616_v15 = vpop.f32.mrf.mxu1 }
 0xc69   :  { %v2543_v16 = vadd.f32 %v1939_v11, %v1626_v14  ;;  %v1625_v17 = vadd.f32 %v1616_v15, %v2342_v0 }
 0xc6b   :  { %v2546_v18 = vadd.f32 %v1939_v11, %v1625_v17  ;;  %v1641_v13 = vsel %vm52_vm0, %v2543_v16, 0.0 }
 0xc6c   :  { %1642 = vadd.xlane.f32.xlu1 %v1641_v13 }
 0xc6d   :  { %v1638_v19 = vsel %vm52_vm0, %v2546_v18, 0.0 }
 0xc6e   :  { %1639 = vadd.xlane.f32.xlu0 %v1638_v19 }
 0xcf5   :  { %v1643_v20 = vpop.xlane.xlu1 %1642 }
 0xcf6   :  { %v1645_v21 = vmul.f32 0.03125, %v1643_v20 }
 0xcf7   :  { %v1640_v22 = vpop.xlane.xlu0 %1639 }
 0xcf8   :  { %v1644_v23 = vmul.f32 0.03125, %v1640_v22  ;;  %v1647_v1 = vsub.f32 %v2543_v16, %v1645_v21 }
 0xcfa   :  { %v1646_v24 = vsub.f32 %v2546_v18, %v1644_v23  ;;  %v1649_v26 = vmul.f32 %v1647_v1, %v1647_v1 }
 0xcfc   :  { %v1648_v25 = vmul.f32 %v1646_v24, %v1646_v24  ;;  %v1653_v27 = vsel %vm52_vm0, %v1649_v26, 0.0 }
 0xcfe   :  { %v1650_v0 = vsel %vm52_vm0, %v1648_v25, 0.0 }
 0xcff   :  { %1651 = vadd.xlane.f32.xlu0 %v1650_v0  ;;  %v1945_v0 = vld [vmem:[%s2651_s13] ss:$0 sm:$0xff] }
 0xd03   :  { %1654 = vadd.xlane.f32.xlu0 %v1653_v27 }
 0xd88   :  { %v1652_v32 = vpop.xlane.xlu0 %1651 }
 0xd89   :  { %v1656_v33 = vmul.f32 0.03125, %v1652_v32 }
 0xd8b   :  { %v1658_v35 = vadd.f32 1e-05, %v1656_v33 }
 0xd8c   :  { %v1655_v34 = vpop.xlane.xlu0 %1654 }
 0xd8d   :  { %2216 = vrsqrt.f32 %v1658_v35  ;;  %v1657_v36 = vmul.f32 0.03125, %v1655_v34 }
 0xd8f   :  { %v1659_v38 = vadd.f32 1e-05, %v1657_v36 }
 0xd91   :  { %2218 = vrsqrt.f32 %v1659_v38 }
 0xd9a   :  { %v2217_v42 = vpop.eup %2216 }
 0xd9b   :  { %v1662_v41 = vmul.f32 %v2217_v42, %v1646_v24 }
 0xd9d   :  { %v1670_v37 = vmul.f32 %v1940_v40, %v1662_v41 }
 0xd9e   :  { %v2219_v44 = vpop.eup %2218 }
 0xd9f   :  { %v1663_v45 = vmul.f32 %v2219_v44, %v1647_v1  ;;  %v1678_v46 = vadd.f32 %v1941_v43, %v1670_v37 }
 0xda1   :  { %v1671_v47 = vmul.f32 %v1940_v40, %v1663_v45  ;;  %2124 = vmatprep.mubr.msk.f32.mxu1 %vm52_vm0, %v1678_v46 }
 0xda3   :  { %v1679_v48 = vadd.f32 %v1941_v43, %v1671_v47 }
 0xda5   :  { %2125 = vmatmul.mubr.msk.f32.vlgmr.msra.gmra.mxu1 %vm52_vm0, %v1679_v48 }
 0xe65   :  { %v2126_v3 = vpop.f32.mrf.mxu1 }
 0xe66   :  { %v1769_v4 = vadd.f32 %v2126_v3, %v1942_v2 }
 0xe67   :  { %v1763_v5 = vpop.f32.mrf.mxu1 }
 0xe68   :  { %v1775_v6 = vmul.f32 0.044715, %v1769_v4  ;;  %v1764_v7 = vadd.f32 %v1942_v2, %v1763_v5  ;;  %v1773_v1 = vmul.f32 0.5, %v1769_v4 }
 0xe6a   :  { %v1777_v8 = vmul.f32 %v1775_v6, %v1769_v4  ;;  %v1774_v9 = vmul.f32 0.044715, %v1764_v7  ;;  %v1772_v22 = vmul.f32 0.5, %v1764_v7 }
 0xe6c   :  { %v1779_v10 = vmul.f32 %v1777_v8, %v1769_v4  ;;  %v1776_v12 = vmul.f32 %v1774_v9, %v1764_v7 }
 0xe6e   :  { %v1781_v11 = vadd.f32 %v1779_v10, %v1769_v4  ;;  %v1778_v14 = vmul.f32 %v1776_v12, %v1764_v7 }
 0xe70   :  { %v1780_v15 = vadd.f32 %v1778_v14, %v1764_v7  ;;  %v1783_v17 = vmul.f32 0.7978846, %v1781_v11 }
 0xe72   :  { %v1782_v13 = vmul.f32 0.7978846, %v1780_v15  ;;  %2220 = vtanh.f32 %v1783_v17 }
 0xe74   :  { %2222 = vtanh.f32 %v1782_v13 }
 0xe7f   :  { %v2221_v19 = vpop.eup %2220 }
 0xe80   :  { %v1787_v21 = vadd.f32 1.0, %v2221_v19 }
 0xe81   :  { %v2223_v20 = vpop.eup %2222 }
 0xe82   :  { %v1786_v23 = vadd.f32 1.0, %v2223_v20  ;;  %v1789_v25 = vmul.f32 %v1787_v21, %v1773_v1 }
 0xe84   :  { %v1788_v24 = vmul.f32 %v1786_v23, %v1772_v22 }
 0xe86   :  { %2159 = vmatprep.mubr.f32.mxu0 %v1788_v24 }
 0xe87   :  { %2160 = vmatmul.mubr.f32.vlgmr.msra.gmra.mxu0 %v1789_v25 }
 0xf47   :  { %v2161_v26 = vpop.f32.mrf.mxu0 }
 0xf48   :  { %v1885_v27 = vadd.f32 %v2161_v26, %v1945_v0 }
 0xf49   :  { %v1879_v28 = vpop.f32.mrf.mxu0 }
 0xf4a   :  { %v1889_v29 = vadd.f32 %v1885_v27, %v2543_v16  ;;  %v1880_v30 = vadd.f32 %v1945_v0, %v1879_v28 }
 0xf4c   :  { %1891 = vst.msk [vmem:[#allocation2 + $0x8] sm:$0xff] %vm52_vm0, %v1889_v29  ;;  %v1888_v31 = vadd.f32 %v1880_v30, %v2546_v18 }
 0xf4e   :  { %1890 = vst.msk [vmem:[#allocation2] sm:$0xff] %vm52_vm0, %v1888_v31 }
 0xf4f   :  { %2235 = shalt.err (!%p2232_p4)
}
 0xf50   :  { %s2263_s13 = smov 128  }
 0xf51   :  { %1903 = dma.vmem_to_hbm [thread:$0]  %s1898_s3, 256, %s2652_s14, [#allocation3], %s2263_s13, %s2263_s13, %s2259_s21  }
 0xf52   :  { %2244 = dma.done.wait [#allocation3], 256  }
 0xf53   :  { %2245 = vsyncadd [#allocation3], 4294967040 }
 0xf54   :  { %1907 = vsyncpa [#allocation3], 1 }

</bundles_post_ra>
